<compile_context>
chip_gen: v5e
topology: v5e:2x2
jax: 0.10.0
libtpu: 0.0.40
codegen_flags: <defaults>
</compile_context>

<pallas_src>
import jax
import jax.numpy as jnp
from jax.experimental import pallas as pl
from jax.experimental.pallas import tpu as pltpu


def _round_up(n, m):
    return ((n + m - 1) // m) * m


def _pad_to(x, target, axis):
    pad = target - x.shape[axis]
    if pad <= 0:
        return x
    widths = [(0, 0)] * x.ndim
    widths[axis] = (0, pad)
    return jnp.pad(x, widths)


def _generator_kernel(z_ref, w1_ref, b1_ref, w2_ref, b2_ref, out_ref, h_ref):
    """One (TB, TN) output tile of tanh(relu(z @ W1 + b1) @ W2 + b2).

    Grid = (batch tiles, N tiles).  z / W1 / b1 have constant block indices
    along the N axis so they are not re-DMA'd per N tile; the hidden
    activation is computed once per batch tile (first N tile) into a bf16
    VMEM scratch and reused.  W2 / b2 / out are streamed per N tile, so the
    W2-tile DMA overlaps the previous tile's matmul + tanh.
    """
    @pl.when(pl.program_id(1) == 0)
    def _():
        h = jnp.dot(z_ref[...], w1_ref[...],
                    preferred_element_type=jnp.float32)       # MXU, f32 acc
        h = jnp.maximum(h + b1_ref[...], 0.0)                  # f32 epilogue (v5e-safe)
        h_ref[...] = h.astype(jnp.bfloat16)                    # bf16 operand for 2nd MXU pass

    o = jnp.dot(h_ref[...], w2_ref[...],
                preferred_element_type=jnp.float32)             # (TB, TN) f32 MXU
    o = o + b2_ref[...]
    out_ref[...] = jnp.tanh(o).astype(out_ref.dtype)            # bf16 lane-dense store


def vanilla_generator_pallas(z, w1, b1, w2, b2, *, tb, tn):
    """N-tiled pallas_call.

    z : (Bp, Kp)  bf16, Bp multiple of tb (tb multiple of 16), Kp mult of 128
    w1: (Kp, Hp)  bf16,  b1: (1, Hp)  f32   (resident)
    w2: (Hp, Np)  bf16,  b2: (1, Np)  f32   (streamed in TN-column tiles)
    out: (Bp, Np) bf16
    """
    Bp, Kp = z.shape
    hidden_p = w1.shape[1]
    out_p = w2.shape[1]
    grid = (Bp // tb, out_p // tn)

    # Explicit VMEM budget: resident operands + 2x double-buffered N tiles,
    # generous headroom, floored at 32 MiB and capped at 64 MiB (v7x-safe).
    bf16, f32 = 2, 4
    resident = (tb * Kp + Kp * hidden_p + tb * hidden_p) * bf16 + hidden_p * f32
    per_tile = hidden_p * tn * bf16 + tn * f32 + tb * tn * bf16
    vmem_limit = int(min(max(4 * (resident + 2 * per_tile), 32 << 20), 64 << 20))

    return pl.pallas_call(
        _generator_kernel,
        out_shape=jax.ShapeDtypeStruct((Bp, out_p), jnp.bfloat16),
        grid_spec=pltpu.PrefetchScalarGridSpec(
            num_scalar_prefetch=0,
            grid=grid,
            in_specs=[
                pl.BlockSpec((tb, Kp), lambda i, j: (i, 0)),        # z  : resident along N
                pl.BlockSpec((Kp, hidden_p), lambda i, j: (0, 0)),  # W1 : resident
                pl.BlockSpec((1, hidden_p), lambda i, j: (0, 0)),   # b1 : resident
                pl.BlockSpec((hidden_p, tn), lambda i, j: (0, j)),  # W2 : streamed N tiles
                pl.BlockSpec((1, tn), lambda i, j: (0, j)),         # b2 : streamed N tiles
            ],
            out_specs=pl.BlockSpec((tb, tn), lambda i, j: (i, j)),
            scratch_shapes=[pltpu.VMEM((tb, hidden_p), jnp.bfloat16)],  # hidden activation
        ),
        compiler_params=pltpu.CompilerParams(
            dimension_semantics=("parallel", "arbitrary"),
            vmem_limit_bytes=vmem_limit,
        ),
    )(z, w1, b1, w2, b2)


class WrapperPallas:
    """JAX/Pallas analogue of the PyTorch Wrapper module (vanilla-GAN / 'z')."""

    def __init__(self, latent, is_style, z_dim, img_shape, hidden, key,
                 tile_n=512, tile_b_max=256):
        assert latent == "z" and not is_style, (
            "only the vanilla-GAN / z-latent path is implemented here")
        self.latent = latent
        self.is_style = is_style
        self.z_dim = z_dim
        self.img_shape = img_shape                      # (C, H, W)
        C, H, W = img_shape
        out_dim = C * H * W
        self.out_dim = out_dim

        # Pad contraction depths to multiples of 128 (lane-dense MXU operands)
        # and the output width to a multiple of the N tile (no assert on shape).
        self.z_pad = _round_up(z_dim, 128)
        self.hidden_pad = _round_up(hidden, 128)
        out_128 = _round_up(out_dim, 128)
        self.tile_n = min(tile_n, out_128)
        self.out_pad = _round_up(out_128, self.tile_n)
        self.tile_b_max = tile_b_max                    # multiple of 16

        # PyTorch nn.Linear-style init (weights and biases ~ U(+-1/sqrt(fan_in))).
        k1, k2, k3, k4 = jax.random.split(key, 4)
        lim1 = 1.0 / (z_dim ** 0.5)
        lim2 = 1.0 / (hidden ** 0.5)
        w1 = jax.random.uniform(k1, (z_dim, hidden), jnp.float32, -lim1, lim1)
        b1 = jax.random.uniform(k2, (hidden,), jnp.float32, -lim1, lim1)
        w2 = jax.random.uniform(k3, (hidden, out_dim), jnp.float32, -lim2, lim2)
        b2 = jax.random.uniform(k4, (out_dim,), jnp.float32, -lim2, lim2)

        # f32 master copies (for the correctness reference).
        self.w1_f32, self.b1_f32, self.w2_f32, self.b2_f32 = w1, b1, w2, b2

        # Kernel-side parameters: bf16 weights (MXU-native, half the DMA),
        # f32 biases, zero-padded once at init (padding contributes exactly 0).
        self.w1 = _pad_to(_pad_to(w1, self.z_pad, 0), self.hidden_pad, 1).astype(jnp.bfloat16)
        self.b1 = _pad_to(b1[None, :], self.hidden_pad, 1)
        self.w2 = _pad_to(_pad_to(w2, self.hidden_pad, 0), self.out_pad, 1).astype(jnp.bfloat16)
        self.b2 = _pad_to(b2[None, :], self.out_pad, 1)

        # Jit the whole sampling step so weights stay hot across repeated calls.
        self._forward = jax.jit(self._forward_impl)

    def _forward_impl(self, param):
        # latent == 'z', vanilla GAN  =>  image = self.model(param)
        B = param.shape[0]
        Bp = _round_up(max(B, 16), 16)          # bf16 packs 16 sublanes per vreg
        if Bp > self.tile_b_max:
            tb = self.tile_b_max
            Bp = _round_up(Bp, tb)
        else:
            tb = Bp
        z = _pad_to(param, self.z_pad, 1)
        z = _pad_to(z, Bp, 0).astype(jnp.bfloat16)
        flat = vanilla_generator_pallas(z, self.w1, self.b1, self.w2, self.b2,
                                        tb=tb, tn=self.tile_n)
        C, H, W = self.img_shape
        # NCHW, matching PyTorch layout; image stays bf16 (halved HBM writeback).
        return flat[:B, :self.out_dim].reshape(B, C, H, W)

    def __call__(self, param):
        return self._forward(param)


def _reference_f32(param, wrapper):
    """Pure f32 JAX reference (f32 master weights, f32 math)."""
    h = jnp.maximum(param @ wrapper.w1_f32 + wrapper.b1_f32, 0.0)
    o = jnp.tanh(h @ wrapper.w2_f32 + wrapper.b2_f32)
    B = param.shape[0]
    C, H, W = wrapper.img_shape
    return o.reshape(B, C, H, W)


if __name__ == "__main__":
    key = jax.random.PRNGKey(0)
    k_param, k_model = jax.random.split(key)

    B, z_dim, hidden = 2, 32, 128
    img_shape = (4, 16, 16)                     # (C, H, W); C*H*W = 1024

    wrapper = WrapperPallas(latent="z", is_style=False, z_dim=z_dim,
                            img_shape=img_shape, hidden=hidden, key=k_model)

    param = jax.random.normal(k_param, (B, z_dim), jnp.float32)

    image = jax.block_until_ready(wrapper(param))
    assert image.shape == (B,) + img_shape
    assert image.dtype == jnp.bfloat16

    # Validate against the true f32 forward (bf16 operands + bf16 output =>
    # moderately loose tolerance; output is tanh-bounded so atol is meaningful).
    ref = _reference_f32(param, wrapper)
    ok = jnp.allclose(image.astype(jnp.float32), ref, atol=2.5e-2, rtol=2.5e-2)
    assert bool(ok), float(jnp.max(jnp.abs(image.astype(jnp.float32) - ref)))

    print("KERNEL_OK")
</pallas_src>

<mosaic_0001>
module attributes {stable_mosaic.version = 11 : i64} {
  func.func @_generator_kernel(%arg0: i32, %arg1: i32, %arg2: memref<16x128xbf16, #tpu.memory_space<vmem>>, %arg3: memref<128x128xbf16, #tpu.memory_space<vmem>>, %arg4: memref<1x128xf32, #tpu.memory_space<vmem>>, %arg5: memref<128x512xbf16, #tpu.memory_space<vmem>>, %arg6: memref<1x512xf32, #tpu.memory_space<vmem>>, %arg7: memref<16x512xbf16, #tpu.memory_space<vmem>>, %arg8: memref<16x128xbf16, #tpu.memory_space<vmem>>) attributes {dimension_semantics = [#tpu.dimension_semantics<parallel>, #tpu.dimension_semantics<arbitrary>], iteration_bounds = array<i64: 1, 2>, scalar_prefetch = 0 : i64, scratch_operands = 1 : i64, tpu.core_type = #tpu.core_type<tc>, window_params = [{transform_indices = @transform_0, window_bounds = array<i64: 16, 128>}, {pipeline_mode = #tpu.pipeline_mode<synchronous>, transform_indices = @transform_1, window_bounds = array<i64: 128, 128>}, {pipeline_mode = #tpu.pipeline_mode<synchronous>, transform_indices = @transform_2, window_bounds = array<i64: 1, 128>}, {transform_indices = @transform_3, window_bounds = array<i64: 128, 512>}, {transform_indices = @transform_4, window_bounds = array<i64: 1, 512>}, {transform_indices = @transform_5, window_bounds = array<i64: 16, 512>}]} {
    %c0_i32 = arith.constant 0 : i32
    %0 = arith.cmpi eq, %arg1, %c0_i32 : i32
    %1 = arith.extui %0 : i1 to i32
    %c0_i32_0 = arith.constant 0 : i32
    %2 = arith.cmpi ne, %1, %c0_i32_0 : i32
    scf.if %2 {
      %c0_8 = arith.constant 0 : index
      %c0_9 = arith.constant 0 : index
      %12 = vector.load %arg2[%c0_8, %c0_9] : memref<16x128xbf16, #tpu.memory_space<vmem>>, vector<16x128xbf16>
      %c0_10 = arith.constant 0 : index
      %c0_11 = arith.constant 0 : index
      %13 = vector.load %arg3[%c0_10, %c0_11] : memref<128x128xbf16, #tpu.memory_space<vmem>>, vector<128x128xbf16>
      %cst_12 = arith.constant dense<0.000000e+00> : vector<16x128xf32>
      %14 = tpu.matmul %12, %13, %cst_12 {dimension_numbers = #tpu.dot_dimension_numbers<[1], [0], [0], [1], [0, 0, 1, 1], [], []>} : vector<16x128xbf16>, vector<128x128xbf16>, vector<16x128xf32> -> vector<16x128xf32>
      %c0_13 = arith.constant 0 : index
      %c0_14 = arith.constant 0 : index
      %15 = vector.load %arg4[%c0_13, %c0_14] : memref<1x128xf32, #tpu.memory_space<vmem>>, vector<1x128xf32>
      %16 = vector.broadcast %15 : vector<1x128xf32> to vector<16x128xf32>
      %17 = arith.addf %14, %16 : vector<16x128xf32>
      %cst_15 = arith.constant 0.000000e+00 : f32
      %18 = vector.broadcast %cst_15 : f32 to vector<16x128xf32>
      %19 = arith.maximumf %17, %18 : vector<16x128xf32>
      %20 = arith.truncf %19 : vector<16x128xf32> to vector<16x128xbf16>
      %c0_16 = arith.constant 0 : index
      %c0_17 = arith.constant 0 : index
      %21 = vector.load %arg8[%c0_16, %c0_17] : memref<16x128xbf16, #tpu.memory_space<vmem>>, vector<16x128xbf16>
      tpu.vector_store %arg8[%c0_16, %c0_17], %20 {strides = array<i32>} : memref<16x128xbf16, #tpu.memory_space<vmem>>, vector<16x128xbf16>,
    } else {
    }
    %c0 = arith.constant 0 : index
    %c0_1 = arith.constant 0 : index
    %3 = vector.load %arg8[%c0, %c0_1] : memref<16x128xbf16, #tpu.memory_space<vmem>>, vector<16x128xbf16>
    %c0_2 = arith.constant 0 : index
    %c0_3 = arith.constant 0 : index
    %4 = vector.load %arg5[%c0_2, %c0_3] : memref<128x512xbf16, #tpu.memory_space<vmem>>, vector<128x512xbf16>
    %cst = arith.constant dense<0.000000e+00> : vector<16x512xf32>
    %5 = tpu.matmul %3, %4, %cst {dimension_numbers = #tpu.dot_dimension_numbers<[1], [0], [0], [1], [0, 0, 1, 1], [], []>} : vector<16x128xbf16>, vector<128x512xbf16>, vector<16x512xf32> -> vector<16x512xf32>
    %c0_4 = arith.constant 0 : index
    %c0_5 = arith.constant 0 : index
    %6 = vector.load %arg6[%c0_4, %c0_5] : memref<1x512xf32, #tpu.memory_space<vmem>>, vector<1x512xf32>
    %7 = vector.broadcast %6 : vector<1x512xf32> to vector<16x512xf32>
    %8 = arith.addf %5, %7 : vector<16x512xf32>
    %9 = math.tanh %8 : vector<16x512xf32>
    %10 = arith.truncf %9 : vector<16x512xf32> to vector<16x512xbf16>
    %c0_6 = arith.constant 0 : index
    %c0_7 = arith.constant 0 : index
    %11 = vector.load %arg7[%c0_6, %c0_7] : memref<16x512xbf16, #tpu.memory_space<vmem>>, vector<16x512xbf16>
    tpu.vector_store %arg7[%c0_6, %c0_7], %10 {strides = array<i32>} : memref<16x512xbf16, #tpu.memory_space<vmem>>, vector<16x512xbf16>,
    return
  }
  func.func @transform_0(%arg0: i32, %arg1: i32) -> (i32, i32) {
    %c0_i32 = arith.constant 0 : i32
    %c0_i32_0 = arith.constant 0 : i32
    return %arg0, %c0_i32 : i32, i32
  }
  func.func @transform_1(%arg0: i32, %arg1: i32) -> (i32, i32) {
    %c0_i32 = arith.constant 0 : i32
    %c0_i32_0 = arith.constant 0 : i32
    %c0_i32_1 = arith.constant 0 : i32
    return %c0_i32, %c0_i32_0 : i32, i32
  }
  func.func @transform_2(%arg0: i32, %arg1: i32) -> (i32, i32) {
    %c0_i32 = arith.constant 0 : i32
    %c0_i32_0 = arith.constant 0 : i32
    %c0_i32_1 = arith.constant 0 : i32
    return %c0_i32, %c0_i32_0 : i32, i32
  }
  func.func @transform_3(%arg0: i32, %arg1: i32) -> (i32, i32) {
    %c0_i32 = arith.constant 0 : i32
    %c0_i32_0 = arith.constant 0 : i32
    return %c0_i32, %arg1 : i32, i32
  }
  func.func @transform_4(%arg0: i32, %arg1: i32) -> (i32, i32) {
    %c0_i32 = arith.constant 0 : i32
    %c0_i32_0 = arith.constant 0 : i32
    return %c0_i32, %arg1 : i32, i32
  }
  func.func @transform_5(%arg0: i32, %arg1: i32) -> (i32, i32) {
    %c0_i32 = arith.constant 0 : i32
    return %arg0, %arg1 : i32, i32
  }
}

</mosaic_0001>

<bundles_post_ra>
// kernel: _forward_impl.1
= control target key start
LH: loop header
LB: loop body
LE: loop exit
PB: predicated region body
PF: predicated region fallthrough
CT: control target
= control target key end

     0   :  { %s1539_s0 = inlined_call_operand.vmem [shape: bf16[16,128], index: 0, kind: input, shape index: {}]   ;;  %s1540_s1 = inlined_call_operand.hbm [shape: bf16[128,128], index: 1, kind: input, shape index: {}]   ;;  %s1541_s2 = inlined_call_operand.vmem [shape: f32[1,128], index: 2, kind: input, shape index: {}]   ;;  %s1542_s3 = inlined_call_operand.hbm [shape: bf16[128,1024], index: 3, kind: input, shape index: {}]   ;;  %s1543_s4 = inlined_call_operand.vmem [shape: f32[1,1024], index: 4, kind: input, shape index: {}]   ;;  %s1544_s5 = inlined_call_operand.vmem [shape: bf16[16,1024], index: 5, kind: output, shape index: {}]  }
   0x1   :  { %1545 = sst [smem:[#allocation10_spill]] %s1540_s1 }
   0x2   :  { %10 = vsyncpa [#allocation4], 0 }
   0x3   :  { %11 = vsyncpa [#allocation6], 0 }
   0x4   :  { %13 = vsyncpa [#allocation6 + $0x1], 0  ;;  %s1320_s18 = smov 0   ;;  %s1322_s19 = smov 0  }
   0x5   :  { %s1324_s20 = smov 0   ;;  %s1326_s21 = smov 0  }
   0x6   :  { %s1328_s22 = smov 0   ;;  %s1330_s23 = smov 0  }
   0x7 LB: > { %s843_s24 = sadd.s32 4294967295, %s1282_s23   ;;  %p119_p0 = scmp.ne.s32.totalorder %s1266_s19, %s1262_s18  ;;  %s1282_s23 = sphi %s1330_s23, %s19_s23   ;;  %s1278_s22 = sphi %s1328_s22, %s1557_s22   ;;  %s1274_s21 = sphi %s1326_s21, %s1556_s21   ;;  %s1270_s20 = sphi %s1324_s20, %s1555_s20   ;;  %s1266_s19 = sphi %s1322_s19, %s1554_s19   ;;  %s1262_s18 = sphi %s1320_s18, %s1553_s18  }
   0x8   : > { %p1350_p1 = scmp.eq.s32.totalorder %s843_s24, 0  ;;  %p1354_p2 = scmp.eq.s32.totalorder %s843_s24, 1 }
   0x9   : > { %p845_p3 = scmp.ge.s32.totalorder %s1282_s23, 1  ;;  %p184_p4 = scmp.lt.s32.totalorder %s1282_s23, 3 }
   0xa   : > { %p1362_p5 = por %p1350_p1, %p119_p0  ;;  %s1550_s1 = sld [smem:[#allocation10_spill]] }
   0xb   : > { %p1366_p6 = pnand %p845_p3, %p184_p4  ;;  %s1284_s7 = smov [#allocation3]  }
   0xc   : > { %s206_s8 = sshll.u32 %s1284_s7, 4  ;;  %s1285_s9 = smov 64   ;;  %s207_s8 = int_to_ptr.vmem [resolvable:$true] %s206_s8 }
   0xd   : > { %p1086_p7 = pneg %p1366_p6  ;;  %s1286_s10 = smov 4  }
   0xe   : > { %s28_s11 = sadd.s32 1, %s1278_s22  ;;  %s106_s12 = sadd.s32 1, %s1270_s20 }
   0xf   : > { %p1087_p8 = pnand %p1086_p7, %p1350_p1  ;;  %p29_p9 = scmp.ge.s32.totalorder %s28_s11, 2 }
  0x10   : > { %s204_s6 = sshll.u32 %s1550_s1, 4  ;;  %p113_p10 = scmp.ne.s32.totalorder %s1270_s20, %s1266_s19  ;;  %s205_s6 = int_to_ptr.hbm [resolvable:$true] %s204_s6 }
  0x11   : > { %1089 = dma.hbm_to_vmem [thread:$0]  (!%p1087_p8), %s205_s6, 1024, %s207_s8, [#allocation4], %s1285_s9, %s1285_s9, %s1286_s10  }
  0x12   : > { %p114_p11 = scmp.eq.s32.totalorder %s1282_s23, 0  ;;  %p1095_p12 = scmp.lt.s32.totalorder %s1282_s23, 2 }
  0x13   : > { %s1559_s11 = smov (%p29_p9, %s28_s11), 0  ;;  %p1391_p0 = por %p1354_p2, %p113_p10 }
  0x14   : > { %p1385_p13 = por %p114_p11, %p113_p10  ;;  %s103_s15 = ssub.s32 %s1278_s22, %s1559_s11 }
  0x15   : > { %s223_s16 = sand.u32 1, %s1270_s20   ;;  %p104_p3 = scmp.eq.s32.totalorder %s103_s15, 0 }
  0x16   : > { %s849_s17 = sshll.u32 %s223_s16, 8  ;;  %s1031_s18 = sshll.u32 %s1278_s22, 4 }
  0x17   : > { %s1400_s24 = scalar_select %p104_p3, %s1270_s20, %s106_s12  }
  0x18   : > { %s232_s6 = scalar_lea.hbm %s1542_s3, %s1031_s18  ;;  %s227_s8 = scalar_lea.vmem [#allocation5], %s849_s17 }
  0x19   : > { %s233_s7 = sshll.u32 %s232_s6, 4  ;;  %s235_s9 = sshll.u32 %s227_s8, 4  ;;  %s234_s7 = int_to_ptr.hbm [resolvable:$true] %s233_s7  ;;  %s236_s9 = int_to_ptr.vmem [resolvable:$true] %s235_s9 }
  0x1a   : > { %p1091_p2 = pnand %p1095_p12, %p1385_p13  ;;  %s224_s26 = scalar_lea.sflag [#allocation6], %s223_s16 }
  0x1b   : > { %s1287_s10 = smov 512   ;;  %s1288_s1 = smov 256  }
  0x1c   : > { %s1289_s15 = smov 16   ;;  %255 = sbr.rel (%p1366_p6) target bundleno = 416 (0x1a0), region = 40 }
  0x1d   : > { %1093 = dma.hbm_to_vmem [thread:$0]  (!%p1091_p2), %s234_s7, 4096, %s236_s9, %s224_s26, %s1287_s10, %s1288_s1, %s1289_s15  }
  0x21   : > { %1253 = dma.done.wait (%p1350_p1), [#allocation4], 1024  }
  0x22   : > { %1255 = vsyncadd (%p1350_p1), [#allocation4], 4294966272  ;;  %s262_s12 = sand.u32 1, %s1266_s19  }
  0x23   : > { %s854_s13 = sshll.u32 %s262_s12, 8  ;;  %s263_s17 = scalar_lea.sflag [#allocation6], %s262_s12 }
  0x24   : > { %s1416_s18 = scalar_lea.vmem [#allocation5], %s854_s13 }
  0x25   : > { %1257 = dma.done.wait (%p1362_p5), %s263_s17, 4096  }
  0x26   : > { %1259 = vsyncadd (%p1362_p5), %s263_s17, 4294963200  ;;  %s855_s1 = sshll.u32 %s262_s12, 5  ;;  %s856_s28 = sshll.u32 %s1274_s21, 2 }
  0x27   : > { %p310_p4 = scmp.lt.s32.totalorder %s856_s28, 7  ;;  %s1429_s30 = scalar_lea.vmem [#allocation7], %s855_s1 }
  0x28   : > { %p857_p1 = scmp.ne.s32.totalorder %s1274_s21, 0 }
  0x29   : > { %s1561_s28 = smov (!%p310_p4, %s856_s28), 7 }
  0x2a   : > { %s312_s29 = scalar_lea.vmem %s1543_s4, %s1561_s28  ;;  %319 = sbr.rel (%p857_p1) target bundleno = 220 (0xdc), region = 52 }
  0x2f   : > { %v1040_v0 = vld [vmem:[#allocation3 + $0x38] sm:$0xff]  ;;  %v1039_v1 = vld [vmem:[#allocation3 + $0x30] sm:$0xff]  ;;  %v1038_v2 = vld [vmem:[#allocation3 + $0x28] sm:$0xff] }
  0x30   : > { %396 = vmatpush.bf16.msra.mxu0 %v1040_v0  ;;  %v1037_v3 = vld [vmem:[#allocation3 + $0x20] sm:$0xff]  ;;  %v1036_v4 = vld [vmem:[#allocation3 + $0x18] sm:$0xff]  ;;  %v1035_v5 = vld [vmem:[#allocation3 + $0x10] sm:$0xff] }
  0x31   : > { %v1034_v6 = vld [vmem:[#allocation3 + $0x8] sm:$0xff]  ;;  %v1033_v7 = vld [vmem:[#allocation3] sm:$0xff]  ;;  %v1032_v8 = vld [vmem:[%s1539_s0] sm:$0xff] }
  0x32   : > { %v1151_v10 = vld [vmem:[%s1541_s2] ss:$0 sm:$0xff] }
  0x34   : > { %397 = vmatpush.bf16.msra.mxu0 %v1039_v1 }
  0x38   : > { %398 = vmatpush.bf16.msra.mxu0 %v1038_v2 }
  0x3c   : > { %399 = vmatpush.bf16.msra.mxu0 %v1037_v3 }
  0x40   : > { %400 = vmatpush.bf16.msra.mxu0 %v1036_v4 }
  0x44   : > { %401 = vmatpush.bf16.msra.mxu0 %v1035_v5 }
  0x48   : > { %402 = vmatpush.bf16.msra.mxu0 %v1034_v6 }
  0x4c   : > { %403 = vmatpush.bf16.msra.mxu0 %v1033_v7 }
  0x4f   : > { %404 = vmatmul.bf16.vlgmr.msra.gmra.mxu0 %v1032_v8 }
  0xcc   : > { %v405_v9 = vpop.f32.mrf.mxu0 }
  0xcd   : > { %v406_v11 = vadd.f32 %v1151_v10, %v405_v9 }
  0xcf   : > { %v410_v14 = vmax.f32 %v406_v11, 0.0 }
  0xd4   : > { %v407_v12 = vpop.f32.mrf.mxu0 }
  0xd5   : > { %v408_v13 = vadd.f32 %v1151_v10, %v407_v12 }
  0xd7   : > { %v411_v15 = vmax.f32 %v408_v13, 0.0 }
  0xd9   : > { %v1078_v16 = vpack.c.bf16 %v411_v15, %v410_v14 }
  0xdb   : > { %1079 = vst [vmem:[#allocation2] sm:$0xff] %v1078_v16  }
  0xdc PF: > { %v1012_v17 = vld [vmem:[%s1416_s18 + $0xe0] sm:$0xf]  ;;  %v1072_v18 = vld [vmem:[%s1416_s18 + $0xec] sm:$0xf0]  ;;  %v1070_v19 = vld [vmem:[%s1416_s18 + $0xe4] sm:$0xf] }
  0xdd   : > { %v1013_v20 = vor.u32 %v1072_v18, %v1012_v17  ;;  %v1014_v21 = vld [vmem:[%s1416_s18 + $0xf0] sm:$0xf0]  ;;  %v1020_v22 = vld [vmem:[%s1416_s18 + $0xe8] sm:$0xf]  ;;  %v1073_v23 = vld [vmem:[%s1416_s18 + $0xf4] sm:$0xf0] }
  0xde   : > { %v1017_v24 = vor.u32 %v1070_v19, %v1014_v21  ;;  %v1021_v25 = vor.u32 %v1073_v23, %v1020_v22  ;;  %v1071_v26 = vld [vmem:[%s1416_s18 + $0xec] sm:$0xf]  ;;  %v1022_v27 = vld [vmem:[%s1416_s18 + $0xf8] sm:$0xf0]  ;;  %v996_v28 = vld [vmem:[%s1416_s18 + $0xc0] sm:$0xf] }
  0xdf   : > { %626 = vmatpush.bf16.msra.mxu0 %v1013_v20  ;;  %v1025_v29 = vor.u32 %v1071_v26, %v1022_v27  ;;  %v1068_v30 = vld [vmem:[%s1416_s18 + $0xcc] sm:$0xf0]  ;;  %v1066_v31 = vld [vmem:[%s1416_s18 + $0xc4] sm:$0xf]  ;;  %v998_v32 = vld [vmem:[%s1416_s18 + $0xd0] sm:$0xf0] }
  0xe0   : > { %640 = vmatpush.bf16.msra.mxu1 %v1017_v24  ;;  %654 = vmatpush.bf16.msra.mxu2 %v1021_v25  ;;  %v997_v33 = vor.u32 %v1068_v30, %v996_v28  ;;  %v1001_v34 = vor.u32 %v1066_v31, %v998_v32  ;;  %v1004_v35 = vld [vmem:[%s1416_s18 + $0xc8] sm:$0xf]  ;;  %v1069_v36 = vld [vmem:[%s1416_s18 + $0xd4] sm:$0xf0]  ;;  %v1067_v37 = vld [vmem:[%s1416_s18 + $0xcc] sm:$0xf] }
  0xe1   : > { %668 = vmatpush.bf16.msra.mxu3 %v1025_v29  ;;  %v1005_v38 = vor.u32 %v1069_v36, %v1004_v35  ;;  %v1006_v39 = vld [vmem:[%s1416_s18 + $0xd8] sm:$0xf0]  ;;  %v980_v40 = vld [vmem:[%s1416_s18 + $0xa0] sm:$0xf]  ;;  %v1064_v41 = vld [vmem:[%s1416_s18 + $0xac] sm:$0xf0] }
  0xe2   : > { %v1009_v42 = vor.u32 %v1067_v37, %v1006_v39  ;;  %v1062_v43 = vld [vmem:[%s1416_s18 + $0xa4] sm:$0xf]  ;;  %v982_v44 = vld [vmem:[%s1416_s18 + $0xb0] sm:$0xf0]  ;;  %v988_v45 = vld [vmem:[%s1416_s18 + $0xa8] sm:$0xf]  ;;  %v981_v46 = vor.u32 %v1064_v41, %v980_v40 }
  0xe3   : > { %627 = vmatpush.bf16.msra.mxu0 %v997_v33  ;;  %v1065_v47 = vld [vmem:[%s1416_s18 + $0xb4] sm:$0xf0]  ;;  %v1063_v48 = vld [vmem:[%s1416_s18 + $0xac] sm:$0xf]  ;;  %v990_v49 = vld [vmem:[%s1416_s18 + $0xb8] sm:$0xf0]  ;;  %v985_v50 = vor.u32 %v1062_v43, %v982_v44 }
  0xe4   : > { %641 = vmatpush.bf16.msra.mxu1 %v1001_v34  ;;  %655 = vmatpush.bf16.msra.mxu2 %v1005_v38  ;;  %v989_v51 = vor.u32 %v1065_v47, %v988_v45  ;;  %v964_v52 = vld [vmem:[%s1416_s18 + $0x80] sm:$0xf]  ;;  %v1060_v53 = vld [vmem:[%s1416_s18 + $0x8c] sm:$0xf0]  ;;  %v1058_v54 = vld [vmem:[%s1416_s18 + $0x84] sm:$0xf]  ;;  %v993_v55 = vor.u32 %v1063_v48, %v990_v49 }
  0xe5   : > { %669 = vmatpush.bf16.msra.mxu3 %v1009_v42  ;;  %v966_v56 = vld [vmem:[%s1416_s18 + $0x90] sm:$0xf0]  ;;  %v972_v57 = vld [vmem:[%s1416_s18 + $0x88] sm:$0xf]  ;;  %v1061_v58 = vld [vmem:[%s1416_s18 + $0x94] sm:$0xf0]  ;;  %v965_v61 = vor.u32 %v1060_v53, %v964_v52 }
  0xe6   : > { %v1059_v59 = vld [vmem:[%s1416_s18 + $0x8c] sm:$0xf]  ;;  %v974_v60 = vld [vmem:[%s1416_s18 + $0x98] sm:$0xf0]  ;;  %v969_v62 = vor.u32 %v1058_v54, %v966_v56  ;;  %v973_v63 = vor.u32 %v1061_v58, %v972_v57  ;;  %v948_v0 = vld [vmem:[%s1416_s18 + $0x60] sm:$0xf] }
  0xe7   : > { %628 = vmatpush.bf16.msra.mxu0 %v981_v46  ;;  %v1056_v1 = vld [vmem:[%s1416_s18 + $0x6c] sm:$0xf0]  ;;  %v1054_v2 = vld [vmem:[%s1416_s18 + $0x64] sm:$0xf]  ;;  %v977_v3 = vor.u32 %v1059_v59, %v974_v60  ;;  %v950_v4 = vld [vmem:[%s1416_s18 + $0x70] sm:$0xf0] }
  0xe8   : > { %642 = vmatpush.bf16.msra.mxu1 %v985_v50  ;;  %656 = vmatpush.bf16.msra.mxu2 %v989_v51  ;;  %v956_v5 = vld [vmem:[%s1416_s18 + $0x68] sm:$0xf]  ;;  %v1057_v6 = vld [vmem:[%s1416_s18 + $0x74] sm:$0xf0]  ;;  %v1055_v7 = vld [vmem:[%s1416_s18 + $0x6c] sm:$0xf]  ;;  %v949_v9 = vor.u32 %v1056_v1, %v948_v0  ;;  %v953_v10 = vor.u32 %v1054_v2, %v950_v4 }
  0xe9   : > { %670 = vmatpush.bf16.msra.mxu3 %v993_v55  ;;  %v958_v8 = vld [vmem:[%s1416_s18 + $0x78] sm:$0xf0]  ;;  %v957_v11 = vor.u32 %v1057_v6, %v956_v5  ;;  %v932_v12 = vld [vmem:[%s1416_s18 + $0x40] sm:$0xf]  ;;  %v1052_v13 = vld [vmem:[%s1416_s18 + $0x4c] sm:$0xf0] }
  0xea   : > { %v1050_v14 = vld [vmem:[%s1416_s18 + $0x44] sm:$0xf]  ;;  %v961_v15 = vor.u32 %v1055_v7, %v958_v8  ;;  %v934_v16 = vld [vmem:[%s1416_s18 + $0x50] sm:$0xf0]  ;;  %v940_v17 = vld [vmem:[%s1416_s18 + $0x48] sm:$0xf]  ;;  %v933_v21 = vor.u32 %v1052_v13, %v932_v12 }
  0xeb   : > { %629 = vmatpush.bf16.msra.mxu0 %v965_v61  ;;  %v1053_v18 = vld [vmem:[%s1416_s18 + $0x54] sm:$0xf0]  ;;  %v1051_v19 = vld [vmem:[%s1416_s18 + $0x4c] sm:$0xf]  ;;  %v942_v20 = vld [vmem:[%s1416_s18 + $0x58] sm:$0xf0]  ;;  %v937_v22 = vor.u32 %v1050_v14, %v934_v16 }
  0xec   : > { %643 = vmatpush.bf16.msra.mxu1 %v969_v62  ;;  %657 = vmatpush.bf16.msra.mxu2 %v973_v63  ;;  %v941_v23 = vor.u32 %v1053_v18, %v940_v17  ;;  %v916_v24 = vld [vmem:[%s1416_s18 + $0x20] sm:$0xf]  ;;  %v1048_v25 = vld [vmem:[%s1416_s18 + $0x2c] sm:$0xf0]  ;;  %v1046_v26 = vld [vmem:[%s1416_s18 + $0x24] sm:$0xf]  ;;  %v945_v27 = vor.u32 %v1051_v19, %v942_v20 }
  0xed   : > { %671 = vmatpush.bf16.msra.mxu3 %v977_v3  ;;  %v918_v28 = vld [vmem:[%s1416_s18 + $0x30] sm:$0xf0]  ;;  %v924_v29 = vld [vmem:[%s1416_s18 + $0x28] sm:$0xf]  ;;  %v1049_v30 = vld [vmem:[%s1416_s18 + $0x34] sm:$0xf0]  ;;  %v917_v33 = vor.u32 %v1048_v25, %v916_v24 }
  0xee   : > { %v1047_v31 = vld [vmem:[%s1416_s18 + $0x2c] sm:$0xf]  ;;  %v926_v32 = vld [vmem:[%s1416_s18 + $0x38] sm:$0xf0]  ;;  %v921_v34 = vor.u32 %v1046_v26, %v918_v28  ;;  %v925_v35 = vor.u32 %v1049_v30, %v924_v29  ;;  %v900_v36 = vld [vmem:[%s1416_s18] sm:$0xf] }
  0xef   : > { %630 = vmatpush.bf16.msra.mxu0 %v949_v9  ;;  %v1044_v37 = vld [vmem:[%s1416_s18 + $0xc] sm:$0xf0]  ;;  %v1042_v38 = vld [vmem:[%s1416_s18 + $0x4] sm:$0xf]  ;;  %v929_v39 = vor.u32 %v1047_v31, %v926_v32  ;;  %v902_v40 = vld [vmem:[%s1416_s18 + $0x10] sm:$0xf0] }
  0xf0   : > { %644 = vmatpush.bf16.msra.mxu1 %v953_v10  ;;  %658 = vmatpush.bf16.msra.mxu2 %v957_v11  ;;  %v908_v41 = vld [vmem:[%s1416_s18 + $0x8] sm:$0xf]  ;;  %v1045_v42 = vld [vmem:[%s1416_s18 + $0x14] sm:$0xf0]  ;;  %v1043_v43 = vld [vmem:[%s1416_s18 + $0xc] sm:$0xf]  ;;  %v901_v45 = vor.u32 %v1044_v37, %v900_v36  ;;  %v905_v46 = vor.u32 %v1042_v38, %v902_v40 }
  0xf1   : > { %672 = vmatpush.bf16.msra.mxu3 %v961_v15  ;;  %v910_v44 = vld [vmem:[%s1416_s18 + $0x18] sm:$0xf0]  ;;  %v909_v47 = vor.u32 %v1045_v42, %v908_v41  ;;  %v450_v50 = vld [vmem:[%s312_s29] sm:$0xf]  ;;  %s1074_s10 = sshll.u32 (%p1391_p0), %s1274_s21, 4 }
  0xf2   : > { %v913_v48 = vor.u32 %v1043_v43, %v910_v44  ;;  %v1041_v49 = vld [vmem:[#allocation2] sm:$0xff]  ;;  %v452_v51 = vperm.slane %v450_v50, 0  ;;  %v453_v52 = vperm.slane %v450_v50, 1  ;;  %v454_v57 = vperm.slane %v450_v50, 2  ;;  %s710_s13 = scalar_lea.vmem (%p1391_p0), %s1544_s5, %s1074_s10 }
  0xf3   : > { %631 = vmatpush.bf16.msra.mxu0 %v933_v21  ;;  %v455_v58 = vperm.slane %v450_v50, 3 }
  0xf4   : > { %645 = vmatpush.bf16.msra.mxu1 %v937_v22  ;;  %659 = vmatpush.bf16.msra.mxu2 %v941_v23 }
  0xf5   : > { %673 = vmatpush.bf16.msra.mxu3 %v945_v27 }
  0xf7   : > { %632 = vmatpush.bf16.msra.mxu0 %v917_v33 }
  0xf8   : > { %646 = vmatpush.bf16.msra.mxu1 %v921_v34  ;;  %660 = vmatpush.bf16.msra.mxu2 %v925_v35 }
  0xf9   : > { %674 = vmatpush.bf16.msra.mxu3 %v929_v39 }
  0xfb   : > { %633 = vmatpush.bf16.msra.mxu0 %v901_v45 }
  0xfc   : > { %647 = vmatpush.bf16.msra.mxu1 %v905_v46  ;;  %661 = vmatpush.bf16.msra.mxu2 %v909_v47 }
  0xfd   : > { %675 = vmatpush.bf16.msra.mxu3 %v913_v48 }
  0xfe   : > { %634 = vmatmul.bf16.vlgmr.msra.gmra.mxu0 %v1041_v49 }
  0xff   : > { %648 = vmatmul.bf16.vlgmr.msra.gmra.mxu1 %v1041_v49  ;;  %662 = vmatmul.bf16.vlgmr.msra.gmra.mxu2 %v1041_v49 }
 0x100   : > { %676 = vmatmul.bf16.vlgmr.msra.gmra.mxu3 %v1041_v49 }
 0x17b   : > { %v635_v53 = vpop.f32.mrf.mxu0 }
 0x17c   : > { %v636_v54 = vadd.f32 %v635_v53, %v452_v51  ;;  %v649_v55 = vpop.f32.mrf.mxu1 }
 0x17d   : > { %v650_v56 = vadd.f32 %v649_v55, %v453_v52 }
 0x17e   : > { %1152 = vtanh.f32 %v636_v54 }
 0x17f   : > { %1154 = vtanh.f32 %v650_v56 }
 0x182   : > { %v663_v59 = vpop.f32.mrf.mxu2 }
 0x183   : > { %v664_v60 = vadd.f32 %v663_v59, %v454_v57  ;;  %v677_v61 = vpop.f32.mrf.mxu3  ;;  %v637_v62 = vpop.f32.mrf.mxu0 }
 0x184   : > { %v1153_v63 = vpop.eup %1152  ;;  %v678_v0 = vadd.f32 %v677_v61, %v455_v58  ;;  %v638_v1 = vadd.f32 %v637_v62, %v452_v51  ;;  %v651_v2 = vpop.f32.mrf.mxu1 }
 0x185   : > { %v1155_v3 = vpop.eup %1154  ;;  %1156 = vtanh.f32 %v664_v60  ;;  %v652_v4 = vadd.f32 %v651_v2, %v453_v52 }
 0x186   : > { %v690_v5 = vpack.c.bf16 %v1155_v3, %v1153_v63  ;;  %1158 = vtanh.f32 %v678_v0 }
 0x187   : > { %1160 = vtanh.f32 %v638_v1 }
 0x188   : > { %694 = vst [vmem:[%s1429_s30] sm:$0xff] %v690_v5  ;;  %1162 = vtanh.f32 %v652_v4 }
 0x18a   : > { %v665_v6 = vpop.f32.mrf.mxu2 }
 0x18b   : > { %v1157_v7 = vpop.eup %1156  ;;  %v666_v8 = vadd.f32 %v665_v6, %v454_v57  ;;  %v679_v9 = vpop.f32.mrf.mxu3 }
 0x18c   : > { %v1159_v10 = vpop.eup %1158  ;;  %v680_v11 = vadd.f32 %v679_v9, %v455_v58 }
 0x18d   : > { %v1161_v12 = vpop.eup %1160  ;;  %v691_v13 = vpack.c.bf16 %v1159_v10, %v1157_v7  ;;  %1164 = vtanh.f32 %v666_v8 }
 0x18e   : > { %v1163_v14 = vpop.eup %1162  ;;  %1166 = vtanh.f32 %v680_v11 }
 0x18f   : > { %695 = vst [vmem:[%s1429_s30 + $0x8] sm:$0xff] %v691_v13  ;;  %v692_v15 = vpack.c.bf16 %v1163_v14, %v1161_v12  ;;  %v723_v19 = vld [vmem:[%s1429_s30] sm:$0xff] (%p1391_p0) }
 0x190   : > { %724 = vst [vmem:[%s710_s13] sm:$0xff] (%p1391_p0), %v723_v19 }
 0x191   : > { %696 = vst [vmem:[%s1429_s30 + $0x10] sm:$0xff] %v692_v15 }
 0x193   : > { %v1165_v16 = vpop.eup %1164  ;;  %704 = sbr.rel (!%p1391_p0) target bundleno = 416 (0x1a0), region = 56 }
 0x194   : > { %v1167_v17 = vpop.eup %1166 }
 0x195   : > { %v693_v18 = vpack.c.bf16 %v1167_v17, %v1165_v16 }
 0x196   : > { %v725_v20 = vld [vmem:[%s1429_s30 + $0x8] sm:$0xff] (%p1391_p0) }
 0x197   : > { %697 = vst [vmem:[%s1429_s30 + $0x18] sm:$0xff] %v693_v18 }
 0x198   : > { %v727_v21 = vld [vmem:[%s1429_s30 + $0x10] sm:$0xff]  ;;  %726 = vst [vmem:[%s710_s13 + $0x8] sm:$0xff] %v725_v20 }
 0x199   : > { %728 = vst [vmem:[%s710_s13 + $0x20] sm:$0xff] %v727_v21 }
 0x19e   : > { %v729_v22 = vld [vmem:[%s1429_s30 + $0x18] sm:$0xff] }
 0x19f   : > { %730 = vst [vmem:[%s710_s13 + $0x28] sm:$0xff] %v729_v22 }
 0x1a0 PF: > { %s19_s23 = sadd.s32 1, %s1282_s23   ;;  %s1553_s18 = smov %s1266_s19 }
 0x1a1   : > { %p16_p5 = scmp.ge.s32.totalorder %s19_s23, 4   ;;  %s1554_s19 = smov %s1270_s20 }
 0x1a2   : > { %s1555_s20 = smov %s1400_s24  ;;  %s1556_s21 = smov %s1278_s22 }
 0x1a3   : > { %s1557_s22 = smov %s1559_s11  ;;  %18 = sbr.rel (!%p16_p5) target bundleno = 7 (0x7), region = 118 }
 0x1a8   :  { %746 = vsyncpa [#allocation4], 1 }
 0x1a9   :  { %748 = vsyncpa [#allocation4 + $0x1], 1 }
 0x1aa   :  { %749 = vsyncpa [#allocation6], 1 }
 0x1ab   :  { %751 = vsyncpa [#allocation6 + $0x1], 1 }

</bundles_post_ra>
